<compile_context>
chip_gen: v5e
topology: v5e:2x2
jax: 0.10.0
libtpu: 0.0.40
codegen_flags: <defaults>
</compile_context>

<pallas_src>
from typing import NamedTuple

import jax
import jax.numpy as jnp
from jax import lax
from jax.experimental import pallas as pl
from jax.experimental.pallas import tpu as pltpu


LANE = 128  # TPU lane width; output last dim padded to a multiple of this.


class FCWeight(NamedTuple):
    """Prepared (transposed, lane-padded) Linear weight + true out_features."""
    w: jax.Array          # (C, O_pad), O_pad % 128 == 0
    out_features: int     # true O (<= O_pad)


def prepare_fc_weight(weight, dtype=None):
    """One-time parameter prep (do NOT call per forward pass).

    weight: (out_channels, in_channels) — PyTorch nn.Linear layout.
    dtype:  optional compute dtype (e.g. jnp.bfloat16 on v6e/v7x: bf16 MXU
            inputs, f32 accumulation inside the kernel).
    """
    o, c = weight.shape
    w_t = weight.T  # (C, O)
    o_pad = ((o + LANE - 1) // LANE) * LANE
    if o_pad != o:
        w_t = jnp.pad(w_t, ((0, 0), (0, o_pad - o)))  # zero cols: math unchanged
    if dtype is not None:
        w_t = w_t.astype(dtype)
    return FCWeight(w=w_t, out_features=o)


def _fc_transpose_kernel(x_ref, w_ref, o_ref):
    # x_ref: (1, C, tile_T)   w_ref: (C, O_pad)   o_ref: (1, tile_T, O_pad)
    # Contract C (dim 0 of the (C, tile_T) slice) against dim 0 of the weight:
    # equivalent to x[b].T @ w with the transpose folded into the MXU feed.
    o_ref[0] = lax.dot_general(
        x_ref[0], w_ref[...],
        dimension_numbers=(((0,), (0,)), ((), ())),
        preferred_element_type=jnp.float32,
    ).astype(o_ref.dtype)


def _choose_tile_t(T, C, O_pad, itemsize_in, itemsize_out):
    """Largest 128-aligned T tile that divides T and fits a v7x-safe budget."""
    budget = 24 << 20  # ~24 MiB for double-buffered x/out tiles + weight (v7x: 64 MiB phys)
    w_bytes = 2 * C * O_pad * itemsize_in
    for cand in (1024, 512, 256, 128):
        if T % cand == 0:
            tile_bytes = 2 * cand * (C * itemsize_in + O_pad * itemsize_out)
            if w_bytes + tile_bytes <= budget:
                return cand
    if T % 128 == 0:
        return 128
    return T  # small / ragged T: one tile spans the whole sequence


def fc_transpose(x, fc_weight: FCWeight = None, *, only_transpose=False):
    """x: (B, C, T).  fc_weight: FCWeight from prepare_fc_weight (FC path)."""
    if only_transpose:
        # XLA handles NCW->NWC layout assignment better than a store-bound
        # Pallas kernel whose minor output dim (C) may be < 128 lanes.
        return jnp.transpose(x, (0, 2, 1))

    if fc_weight is None:
        raise ValueError("fc_transpose: fc_weight is required when only_transpose=False")

    B, C, T = x.shape
    w_t, O = fc_weight.w, fc_weight.out_features
    C_w, O_pad = w_t.shape
    if C_w != C:
        raise ValueError(f"weight in_channels {C_w} != x channels {C}")

    out_dtype = x.dtype                      # keep caller-visible dtype (f32 by default)
    compute_dtype = w_t.dtype                # bf16 on v6e/v7x if prepared that way
    if x.dtype != compute_dtype:
        x = x.astype(compute_dtype)

    itemsize_in = jnp.dtype(compute_dtype).itemsize
    itemsize_out = jnp.dtype(out_dtype).itemsize
    tile_t = _choose_tile_t(T, C, O_pad, itemsize_in, itemsize_out)
    grid = (B, T // tile_t)

    # Explicit VMEM budget (v7x has only 64 MiB physical / 32 MiB scoped default).
    x_tile_bytes = C * tile_t * itemsize_in
    out_tile_bytes = tile_t * O_pad * itemsize_out
    w_bytes = C * O_pad * itemsize_in
    required = 2 * (x_tile_bytes + out_tile_bytes) + 2 * w_bytes
    vmem_limit = int(min(max(2 * required, 8 << 20), 100 << 20))

    out = pl.pallas_call(
        _fc_transpose_kernel,
        out_shape=jax.ShapeDtypeStruct((B, T, O_pad), out_dtype),
        grid_spec=pltpu.PrefetchScalarGridSpec(
            num_scalar_prefetch=0,
            grid=grid,
            in_specs=[
                # x tile: one batch row, all channels, a 128-aligned T window.
                pl.BlockSpec((1, C, tile_t), lambda b, t: (b, 0, t)),
                # weight: constant index_map -> stays resident, DMA'd once.
                pl.BlockSpec((C, O_pad), lambda b, t: (0, 0)),
            ],
            out_specs=pl.BlockSpec((1, tile_t, O_pad), lambda b, t: (b, t, 0)),
        ),
        compiler_params=pltpu.CompilerParams(
            dimension_semantics=("parallel", "parallel"),  # both TCs on v7x
            vmem_limit_bytes=vmem_limit,
        ),
    )(x, w_t)

    if O != O_pad:
        out = out[..., :O]
    return out


if __name__ == "__main__":
    key = jax.random.PRNGKey(0)
    kx, kw, kw2, kx2 = jax.random.split(key, 4)

    # Shapes implied by FCTranspose: x (batch, in_channels, seq).
    B, C, T, O = 2, 64, 16, 128
    x = jax.random.normal(kx, (B, C, T), dtype=jnp.float32)
    # nn.Linear weight layout: (out_channels, in_channels).
    weight = jax.random.normal(kw, (O, C), dtype=jnp.float32) * (1.0 / jnp.sqrt(C))

    # --- FC path, lane-dense O, small T (single T tile) ---
    fcw = prepare_fc_weight(weight)  # one-time param prep
    out = jax.block_until_ready(fc_transpose(x, fcw))
    ref = jnp.einsum("bct,oc->bto", x, weight)
    assert out.shape == (B, T, O)
    assert jnp.allclose(out, ref, atol=1e-5, rtol=1e-5)

    # --- FC path, T multiple of 128 -> multi-tile grid over T ---
    T2 = 384
    x2 = jax.random.normal(kx2, (B, C, T2), dtype=jnp.float32)
    out2 = jax.block_until_ready(fc_transpose(x2, fcw))
    ref2 = jnp.einsum("bct,oc->bto", x2, weight)
    assert out2.shape == (B, T2, O)
    assert jnp.allclose(out2, ref2, atol=1e-5, rtol=1e-5)

    # --- FC path with non-128-multiple O (exercises pad + slice wrapper) ---
    O3 = 40
    weight3 = jax.random.normal(kw2, (O3, C), dtype=jnp.float32) * (1.0 / jnp.sqrt(C))
    fcw3 = prepare_fc_weight(weight3)
    out3 = jax.block_until_ready(fc_transpose(x, fcw3))
    ref3 = jnp.einsum("bct,oc->bto", x, weight3)
    assert out3.shape == (B, T, O3)
    assert jnp.allclose(out3, ref3, atol=1e-5, rtol=1e-5)

    # --- bf16-input / f32-accumulate path (v6e / v7x recommendation) ---
    fcw_bf16 = prepare_fc_weight(weight, dtype=jnp.bfloat16)
    out_bf = jax.block_until_ready(fc_transpose(x, fcw_bf16))
    assert out_bf.shape == (B, T, O)
    assert out_bf.dtype == jnp.float32  # output keeps x's dtype; accumulation is f32
    assert jnp.allclose(out_bf, ref, atol=2e-1, rtol=5e-2)

    # --- transpose-only path (only_transpose=True) ---
    out_t = jax.block_until_ready(fc_transpose(x, only_transpose=True))
    assert out_t.shape == (B, T, C)
    assert jnp.allclose(out_t, jnp.transpose(x, (0, 2, 1)), atol=0, rtol=0)

    print("KERNEL_OK")
</pallas_src>

<mosaic_0001>
module attributes {stable_mosaic.version = 11 : i64} {
  func.func @_fc_transpose_kernel(%arg0: i32, %arg1: i32, %arg2: memref<1x64x16xf32, #tpu.memory_space<vmem>>, %arg3: memref<64x128xf32, #tpu.memory_space<vmem>>, %arg4: memref<1x16x128xf32, #tpu.memory_space<vmem>>) attributes {dimension_semantics = [#tpu.dimension_semantics<parallel>, #tpu.dimension_semantics<parallel>], iteration_bounds = array<i64: 2, 1>, scalar_prefetch = 0 : i64, scratch_operands = 0 : i64, tpu.core_type = #tpu.core_type<tc>, window_params = [{transform_indices = @transform_0, window_bounds = array<i64: 1, 64, 16>}, {pipeline_mode = #tpu.pipeline_mode<synchronous>, transform_indices = @transform_1, window_bounds = array<i64: 64, 128>}, {transform_indices = @transform_2, window_bounds = array<i64: 1, 16, 128>}]} {
    %c0 = arith.constant 0 : index
    %c0_0 = arith.constant 0 : index
    %c0_1 = arith.constant 0 : index
    %0 = vector.load %arg2[%c0, %c0_0, %c0_1] : memref<1x64x16xf32, #tpu.memory_space<vmem>>, vector<1x64x16xf32>
    %1 = vector.shape_cast %0 : vector<1x64x16xf32> to vector<64x16xf32>
    %c0_2 = arith.constant 0 : index
    %c0_3 = arith.constant 0 : index
    %2 = vector.load %arg3[%c0_2, %c0_3] : memref<64x128xf32, #tpu.memory_space<vmem>>, vector<64x128xf32>
    %cst = arith.constant dense<0.000000e+00> : vector<16x128xf32>
    %3 = tpu.matmul %1, %2, %cst {dimension_numbers = #tpu.dot_dimension_numbers<[0], [0], [1], [1], [0, 1, 1, 1], [], []>} : vector<64x16xf32>, vector<64x128xf32>, vector<16x128xf32> -> vector<16x128xf32>
    %c0_4 = arith.constant 0 : index
    %c0_5 = arith.constant 0 : index
    %c0_6 = arith.constant 0 : index
    %4 = vector.load %arg4[%c0_4, %c0_5, %c0_6] : memref<1x16x128xf32, #tpu.memory_space<vmem>>, vector<1x16x128xf32>
    %5 = vector.shape_cast %4 : vector<1x16x128xf32> to vector<16x128xf32>
    %6 = vector.shape_cast %3 : vector<16x128xf32> to vector<1x16x128xf32>
    tpu.vector_store %arg4[%c0_4, %c0_5, %c0_6], %6 {strides = array<i32>} : memref<1x16x128xf32, #tpu.memory_space<vmem>>, vector<1x16x128xf32>,
    return
  }
  func.func @transform_0(%arg0: i32, %arg1: i32) -> (i32, i32, i32) {
    %c0_i32 = arith.constant 0 : i32
    %c0_i32_0 = arith.constant 0 : i32
    return %arg0, %c0_i32, %arg1 : i32, i32, i32
  }
  func.func @transform_1(%arg0: i32, %arg1: i32) -> (i32, i32) {
    %c0_i32 = arith.constant 0 : i32
    %c0_i32_0 = arith.constant 0 : i32
    %c0_i32_1 = arith.constant 0 : i32
    return %c0_i32, %c0_i32_0 : i32, i32
  }
  func.func @transform_2(%arg0: i32, %arg1: i32) -> (i32, i32, i32) {
    %c0_i32 = arith.constant 0 : i32
    %c0_i32_0 = arith.constant 0 : i32
    return %arg0, %arg1, %c0_i32 : i32, i32, i32
  }
}

</mosaic_0001>

<bundles_post_ra>
// kernel: tpu_custom_call.1
= control target key start
LH: loop header
LB: loop body
LE: loop exit
PB: predicated region body
PF: predicated region fallthrough
CT: control target
= control target key end

     0   :  { %7 = vsyncpa [#allocation3], 0  ;;  %s656_s0 = inlined_call_operand.vmem [shape: f32[2,64,16], index: 0, kind: input, shape index: {}]   ;;  %s657_s1 = inlined_call_operand.vmem [shape: f32[64,128], index: 1, kind: input, shape index: {}]   ;;  %s658_s2 = inlined_call_operand.hbm [shape: f32[2,16,128], index: 2, kind: output, shape index: {}]  }
   0x1   :  { %9 = vsyncpa [#allocation3 + $0x1], 0  ;;  %s525_s9 = smov 0   ;;  %s527_s10 = smov 0  }
   0x2   :  { %s529_s11 = smov 0   ;;  %s531_s12 = smov 0  }
   0x3   :  { %s533_s13 = smov 0   ;;  %s535_s14 = smov 0  }
   0x4 LB: > { %s345_s15 = sadd.s32 4294967295, %s506_s14   ;;  %s346_s16 = sadd.s32 4294967294, %s506_s14   ;;  %s506_s14 = sphi %s535_s14, %s15_s14   ;;  %s502_s13 = sphi %s533_s13, %s665_s13   ;;  %s498_s12 = sphi %s531_s12, %s664_s12   ;;  %s494_s11 = sphi %s529_s11, %s663_s11   ;;  %s490_s10 = sphi %s527_s10, %s662_s10   ;;  %s486_s9 = sphi %s525_s9, %s661_s9  }
   0x5   : > { %s27_s17 = sadd.s32 1, %s502_s13  ;;  %s85_s18 = sadd.s32 1, %s494_s11 }
   0x6   : > { %p29_p0 = scmp.ge.s32.totalorder %s27_s17, 2  ;;  %p95_p1 = scmp.ne.s32.totalorder %s494_s11, %s490_s10 }
   0x7   : > { %p96_p2 = scmp.eq.s32.totalorder %s345_s15, 1  ;;  %p101_p3 = scmp.ne.s32.totalorder %s490_s10, %s486_s9 }
   0x8   : > { %s667_s17 = smov (%p29_p0, %s27_s17), 0  ;;  %p102_p5 = scmp.eq.s32.totalorder %s346_s16, 1 }
   0x9   : > { %p565_p4 = por %p96_p2, %p95_p1  ;;  %s80_s20 = ssub.s32 %s502_s13, %s667_s17 }
   0xa   : > { %p349_p6 = scmp.ge.s32.totalorder %s506_s14, 1  ;;  %p83_p7 = scmp.eq.s32.totalorder %s80_s20, 0 }
   0xb   : > { %p572_p8 = por %p102_p5, %p101_p3  ;;  %p134_p9 = scmp.lt.s32.totalorder %s506_s14, 3 }
   0xc   : > { %s578_s22 = scalar_select %p83_p7, %s494_s11, %s85_s18  }
   0xd   : > { %p135_p10 = pnand %p349_p6, %p134_p9 }
   0xe   : > { %p159_p11 = scmp.lt.s32.totalorder (!%p135_p10), %s498_s12, 1  ;;  %s156_s26 = sand.u32 (!%p135_p10), 1, %s490_s10  }
   0xf   : > { %138 = sbr.rel (%p135_p10) target bundleno = 328 (0x148), region = 28  ;;  %s350_s28 = sshll.u32 (!%p135_p10), %s156_s26, 4 }
  0x10   : > { %s361_s29 = sshll.u32 (!%p135_p10), %s498_s12, 4  ;;  %s158_s5 = scalar_lea.vmem (!%p135_p10), [#allocation2], %s350_s28 }
  0x11   : > { %s262_s4 = scalar_lea.hbm (!%p135_p10), %s658_s2, %s361_s29  ;;  %s263_s6 = sshll.u32 (!%p135_p10), %s158_s5, 4  ;;  %s264_s6 = int_to_ptr.vmem [resolvable:$true] %s263_s6 }
  0x12   : > { %s265_s7 = sshll.u32 (!%p135_p10), %s262_s4, 4  ;;  %s448_s18 = scalar_lea.hbm (!%p135_p10), %s658_s2, 32  ;;  %s266_s7 = int_to_ptr.hbm [resolvable:$true] %s265_s7 }
  0x13   : > { %s442_s8 = sshra.s32 (!%p135_p10), %s266_s7, 4  ;;  %s443_s8 = int_to_ptr.hbm [resolvable:$true] %s442_s8 }
  0x14   : > { %s160_s23 = scalar_select %p159_p11, %s498_s12, 1  ;;  %v183_v4 = vld [vmem:[%s657_s1 + $0x38] sm:$0xff]  ;;  %v182_v5 = vld [vmem:[%s657_s1 + $0x30] sm:$0xff]  ;;  %v181_v6 = vld [vmem:[%s657_s1 + $0x28] sm:$0xff]  ;;  %vm216_vm0 = vcmask 523264  }
  0x15   : > { %231 = vmatpush.msra.mxu0 %v183_v4  ;;  %362 = vmatpush.msra.mxu1 %v183_v4  ;;  %v180_v7 = vld [vmem:[%s657_s1 + $0x20] sm:$0xff]  ;;  %v179_v9 = vld [vmem:[%s657_s1 + $0x18] sm:$0xff]  ;;  %v178_v10 = vld [vmem:[%s657_s1 + $0x10] sm:$0xff]  ;;  %s444_s15 = scalar_lea.hbm %s443_s8, 16  ;;  %p449_p1 = scmp.lt.s32.totalorder %s443_s8, %s658_s2 }
  0x16   : > { %s360_s24 = sshll.u32 %s160_s23, 6  ;;  %v177_v11 = vld [vmem:[%s657_s1 + $0x8] sm:$0xff]  ;;  %v176_v12 = vld [vmem:[%s657_s1] sm:$0xff]  ;;  %p445_p12 = scmp.ne.s32.totalorder %s443_s8, %s444_s15 }
  0x17   : > { %s585_s27 = scalar_lea.vmem %s656_s0, %s360_s24  ;;  %232 = vmatpush.msra.mxu0 %v182_v5  ;;  %363 = vmatpush.msra.mxu1 %v182_v5  ;;  %p450_p2 = scmp.lt.s32.totalorder %s448_s18, %s444_s15 }
  0x18   : > { %v168_v0 = vld [vmem:[%s585_s27] sm:$0xff]  ;;  %v169_v1 = vld [vmem:[%s585_s27 + $0x8] sm:$0xff]  ;;  %v170_v2 = vld [vmem:[%s585_s27 + $0x10] sm:$0xff]  ;;  %p446_p13 = pnand %p445_p12, %p565_p4 }
  0x19   : > { %184 = vxpose.xlu0.b32.start [1/8] (short) (narrow) %v168_v0, 16  ;;  %v171_v3 = vld [vmem:[%s585_s27 + $0x18] sm:$0xff]  ;;  %v172_v8 = vld [vmem:[%s585_s27 + $0x20] sm:$0xff]  ;;  %233 = vmatpush.msra.mxu0 %v181_v6  ;;  %v173_v13 = vld [vmem:[%s585_s27 + $0x28] sm:$0xff]  ;;  %p451_p3 = por %p450_p2, %p449_p1 }
  0x1a   : > { %364 = vmatpush.msra.mxu1 %v181_v6  ;;  %v174_v14 = vld [vmem:[%s585_s27 + $0x30] sm:$0xff]  ;;  %v175_v15 = vld [vmem:[%s585_s27 + $0x38] sm:$0xff]  ;;  %s249_s27 = scalar_lea.sflag [#allocation3], %s156_s26  ;;  %p447_p0 = pneg %p446_p13 }
  0x1b   : > { %234 = vmatpush.msra.mxu0 %v180_v7 }
  0x1c   : > { %365 = vmatpush.msra.mxu1 %v180_v7  ;;  %p452_p5 = pnand %p451_p3, %p447_p0 }
  0x1d   : > { %235 = vmatpush.msra.mxu0 %v179_v9 }
  0x1e   : > { %366 = vmatpush.msra.mxu1 %v179_v9 }
  0x1f   : > { %236 = vmatpush.msra.mxu0 %v178_v10 }
  0x20   : > { %367 = vmatpush.msra.mxu1 %v178_v10 }
  0x21   : > { %185 = vxpose.xlu0.b32.cont [2/8] (short) (narrow) %v169_v1, 16  ;;  %237 = vmatpush.msra.mxu0 %v177_v11 }
  0x22   : > { %368 = vmatpush.msra.mxu1 %v177_v11 }
  0x23   : > { %238 = vmatpush.msra.mxu0 %v176_v12 }
  0x24   : > { %369 = vmatpush.msra.mxu1 %v176_v12 }
  0x29   : > { %186 = vxpose.xlu0.b32.cont [3/8] (short) (narrow) %v170_v2, 16 }
  0x31   : > { %187 = vxpose.xlu0.b32.cont [4/8] (short) (narrow) %v171_v3, 16 }
  0x39   : > { %188 = vxpose.xlu0.b32.cont [5/8] (short) (narrow) %v172_v8, 16 }
  0x41   : > { %189 = vxpose.xlu0.b32.cont [6/8] (short) (narrow) %v173_v13, 16 }
  0x49   : > { %190 = vxpose.xlu0.b32.cont [7/8] (short) (narrow) %v174_v14, 16 }
  0x51   : > { %191 = vxpose.xlu0.b32.end [8/8] (short) (narrow) %v175_v15, 16 }
  0xbd   : > { %v200_v16 = vpop.trf.xlu0 }
  0xbe   : > { %353 = vmatmul.msk.f32.vlgmr.msra.gmra.mxu0 %vm216_vm0, %v200_v16 }
  0xc5   : > { %v201_v17 = vpop.trf.xlu0 }
  0xc6   : > { %354 = vmatmul.msk.f32.vlgmr.msra.gmra.mxu1 %vm216_vm0, %v201_v17 }
 0x13b   : > { %v240_v18 = vpop.f32.mrf.mxu0 }
 0x13c   : > { %246 = vst [vmem:[%s158_s5] sm:$0xff] %v240_v18 }
 0x143   : > { %v243_v19 = vpop.f32.mrf.mxu1 }
 0x144   : > { %247 = vst [vmem:[%s158_s5 + $0x8] sm:$0xff] %v243_v19 }
 0x145   : > { %455 = shalt.err (!%p452_p5)
}
 0x146   : > { %s508_s24 = smov 128   ;;  %s509_s25 = smov 8  }
 0x147   : > { %370 = dma.vmem_to_hbm [thread:$0]  (%p565_p4), %s264_s6, 256, %s266_s7, %s249_s27, %s508_s24, %s508_s24, %s509_s25  }
 0x148 PF: > { %p376_p6 = scmp.ge.s32.totalorder %s506_s14, 2  ;;  %s280_s26 = sand.u32 1, %s486_s9  }
 0x149   : > { %s281_s28 = scalar_lea.sflag [#allocation3], %s280_s26 }
 0x14a   : > { %p373_p7 = pnand %p376_p6, %p572_p8 }
 0x14c   : > { %p374_p9 = pneg %p373_p7 }
 0x14e   : > { %481 = dma.done.wait (%p374_p9), %s281_s28, 256  }
 0x14f   : > { %483 = vsyncadd (%p374_p9), %s281_s28, 4294967040  ;;  %s15_s14 = sadd.s32 1, %s506_s14   ;;  %s661_s9 = smov %s490_s10 }
 0x150   : > { %p12_p10 = scmp.ge.s32.totalorder %s15_s14, 4   ;;  %s662_s10 = smov %s494_s11 }
 0x151   : > { %s663_s11 = smov %s578_s22  ;;  %s664_s12 = smov %s502_s13 }
 0x152   : > { %s665_s13 = smov %s667_s17  ;;  %14 = sbr.rel (!%p12_p10) target bundleno = 4 (0x4), region = 63 }
 0x157   :  { %287 = vsyncpa [#allocation3], 1 }
 0x158   :  { %289 = vsyncpa [#allocation3 + $0x1], 1 }

</bundles_post_ra>
